<compile_context>
chip_gen: v5e
topology: v5e:2x2
jax: 0.10.0
libtpu: 0.0.40
codegen_flags: <defaults>
</compile_context>

<pallas_src>
import jax
import jax.numpy as jnp
import numpy as np
from jax.experimental import pallas as pl
from jax.experimental.pallas import tpu as pltpu

# ------------------------- small demo dimensions ----------------------------
NZ = 128                   # stand-in for nz = 100 (padded to a lane multiple)
H1 = 256                   # stand-in for 1024
H2 = 512                   # stand-in for 4096
IMG_H, IMG_W = 16, 32      # stand-in for (218, 178)
IMAGE_SIZE = IMG_H * IMG_W # 512
BATCH = 8
TN3 = 128                  # final-layer output tile (lane-dense, multiple of 128)


# ----------------------------- fused Pallas kernel ---------------------------
def _generator_fused_kernel(z_ref, w1_ref, b1_ref, w2_ref, b2_ref,
                            w3_ref, b3_ref, o_ref, h2_ref):
    """Fused 3-layer MLP.  Grid axis 0 tiles the final output-feature dim."""
    j = pl.program_id(0)

    # Layers 1 & 2: computed exactly once; result kept in VMEM scratch and
    # reused by every grid step (no HBM round trip for the intermediates).
    @pl.when(j == 0)
    def _():
        h1 = jnp.dot(z_ref[...], w1_ref[...], preferred_element_type=jnp.float32)
        h1 = jnp.maximum(h1 + b1_ref[...], 0.0)                 # ReLU
        h2 = jnp.dot(h1, w2_ref[...], preferred_element_type=jnp.float32)
        h2_ref[...] = jnp.maximum(h2 + b2_ref[...], 0.0)        # ReLU

    # Layer 3 for this output-column tile (full K in one tile -> no accumulator).
    y = jnp.dot(h2_ref[...], w3_ref[...], preferred_element_type=jnp.float32)
    o_ref[...] = jnp.tanh(y + b3_ref[...]).astype(o_ref.dtype)  # Tanh


def generator_forward(params, z, *, tn3=TN3):
    """z: (B, NZ) float32 -> (B, 1, IMG_H, IMG_W) in [-1, 1], like the PyTorch module."""
    (w1, b1), (w2, b2), (w3, b3) = params
    B, nz = z.shape
    h1 = w1.shape[1]
    h2 = w2.shape[1]
    n_out = w3.shape[1]
    assert n_out % tn3 == 0 and tn3 % 128 == 0
    assert n_out == IMAGE_SIZE

    grid = (n_out // tn3,)

    cost = pl.CostEstimate(
        flops=2 * (B * nz * h1 + B * h1 * h2 + B * h2 * n_out),
        transcendentals=B * n_out,
        bytes_accessed=4 * (B * nz + nz * h1 + h1 + h1 * h2 + h2
                            + h2 * n_out + n_out + B * n_out),
    )

    flat = pl.pallas_call(
        _generator_fused_kernel,
        out_shape=jax.ShapeDtypeStruct((B, n_out), z.dtype),
        grid_spec=pltpu.PrefetchScalarGridSpec(
            num_scalar_prefetch=0,
            grid=grid,
            in_specs=[
                pl.BlockSpec((B, nz), lambda j: (0, 0)),     # z       (full, resident)
                pl.BlockSpec((nz, h1), lambda j: (0, 0)),    # w1      (full, resident)
                pl.BlockSpec((1, h1), lambda j: (0, 0)),     # b1
                pl.BlockSpec((h1, h2), lambda j: (0, 0)),    # w2      (full, resident)
                pl.BlockSpec((1, h2), lambda j: (0, 0)),     # b2
                pl.BlockSpec((h2, tn3), lambda j: (0, j)),   # w3 column tile (full K)
                pl.BlockSpec((1, tn3), lambda j: (0, j)),    # b3 tile
            ],
            out_specs=pl.BlockSpec((B, tn3), lambda j: (0, j)),
            scratch_shapes=[pltpu.VMEM((B, h2), jnp.float32)],   # h2 activations
        ),
        compiler_params=pltpu.CompilerParams(
            # h2 is produced at j == 0 and carried in scratch across later
            # steps, so the grid axis must run sequentially on one core.
            dimension_semantics=("arbitrary",),
        ),
        cost_estimate=cost,
    )(z, w1, b1, w2, b2, w3, b3)

    return flat.reshape(-1, 1, IMG_H, IMG_W)   # .view(-1, 1, 218, 178) analogue


# --------------------------- params & pure-JAX reference ---------------------
def init_generator_params(key):
    """Deterministic params matching nn.Linear default init (uniform +-1/sqrt(fan_in))."""
    ks = jax.random.split(key, 6)

    def lin(kw, kb, fan_in, fan_out):
        bound = 1.0 / np.sqrt(fan_in)
        w = jax.random.uniform(kw, (fan_in, fan_out), jnp.float32, -bound, bound)
        b = jax.random.uniform(kb, (1, fan_out), jnp.float32, -bound, bound)
        return w, b

    w1, b1 = lin(ks[0], ks[1], NZ, H1)
    w2, b2 = lin(ks[2], ks[3], H1, H2)
    w3, b3 = lin(ks[4], ks[5], H2, IMAGE_SIZE)
    return (w1, b1), (w2, b2), (w3, b3)


def generator_reference(params, z):
    (w1, b1), (w2, b2), (w3, b3) = params
    h = jnp.maximum(z @ w1 + b1, 0.0)
    h = jnp.maximum(h @ w2 + b2, 0.0)
    out = jnp.tanh(h @ w3 + b3)
    return out.reshape(-1, 1, IMG_H, IMG_W)


if __name__ == "__main__":
    key = jax.random.PRNGKey(0)
    k_params, k_z = jax.random.split(key)

    params = init_generator_params(k_params)
    z = jax.random.normal(k_z, (BATCH, NZ), dtype=jnp.float32)

    out = jax.block_until_ready(generator_forward(params, z))
    ref = generator_reference(params, z)

    assert out.shape == (BATCH, 1, IMG_H, IMG_W)
    np.testing.assert_allclose(np.asarray(out), np.asarray(ref), rtol=2e-5, atol=2e-5)

    print("KERNEL_OK")
</pallas_src>

<mosaic_0001>
module attributes {stable_mosaic.version = 11 : i64} {
  func.func @_generator_fused_kernel(%arg0: i32, %arg1: memref<8x128xf32, #tpu.memory_space<vmem>>, %arg2: memref<128x256xf32, #tpu.memory_space<vmem>>, %arg3: memref<1x256xf32, #tpu.memory_space<vmem>>, %arg4: memref<256x512xf32, #tpu.memory_space<vmem>>, %arg5: memref<1x512xf32, #tpu.memory_space<vmem>>, %arg6: memref<512x128xf32, #tpu.memory_space<vmem>>, %arg7: memref<1x128xf32, #tpu.memory_space<vmem>>, %arg8: memref<8x128xf32, #tpu.memory_space<vmem>>, %arg9: memref<8x512xf32, #tpu.memory_space<vmem>>) attributes {dimension_semantics = [#tpu.dimension_semantics<arbitrary>], iteration_bounds = array<i64: 4>, scalar_prefetch = 0 : i64, scratch_operands = 1 : i64, tpu.core_type = #tpu.core_type<tc>, window_params = [{pipeline_mode = #tpu.pipeline_mode<synchronous>, transform_indices = @transform_0, window_bounds = array<i64: 8, 128>}, {pipeline_mode = #tpu.pipeline_mode<synchronous>, transform_indices = @transform_1, window_bounds = array<i64: 128, 256>}, {pipeline_mode = #tpu.pipeline_mode<synchronous>, transform_indices = @transform_2, window_bounds = array<i64: 1, 256>}, {pipeline_mode = #tpu.pipeline_mode<synchronous>, transform_indices = @transform_3, window_bounds = array<i64: 256, 512>}, {pipeline_mode = #tpu.pipeline_mode<synchronous>, transform_indices = @transform_4, window_bounds = array<i64: 1, 512>}, {transform_indices = @transform_5, window_bounds = array<i64: 512, 128>}, {transform_indices = @transform_6, window_bounds = array<i64: 1, 128>}, {transform_indices = @transform_7, window_bounds = array<i64: 8, 128>}]} {
    %c0_i32 = arith.constant 0 : i32
    %0 = arith.cmpi eq, %arg0, %c0_i32 : i32
    %1 = arith.extui %0 : i1 to i32
    %c0_i32_0 = arith.constant 0 : i32
    %2 = arith.cmpi ne, %1, %c0_i32_0 : i32
    scf.if %2 {
      %c0_8 = arith.constant 0 : index
      %c0_9 = arith.constant 0 : index
      %11 = vector.load %arg1[%c0_8, %c0_9] : memref<8x128xf32, #tpu.memory_space<vmem>>, vector<8x128xf32>
      %c0_10 = arith.constant 0 : index
      %c0_11 = arith.constant 0 : index
      %12 = vector.load %arg2[%c0_10, %c0_11] : memref<128x256xf32, #tpu.memory_space<vmem>>, vector<128x256xf32>
      %cst_12 = arith.constant dense<0.000000e+00> : vector<8x256xf32>
      %13 = tpu.matmul %11, %12, %cst_12 {dimension_numbers = #tpu.dot_dimension_numbers<[1], [0], [0], [1], [0, 0, 1, 1], [], []>} : vector<8x128xf32>, vector<128x256xf32>, vector<8x256xf32> -> vector<8x256xf32>
      %c0_13 = arith.constant 0 : index
      %c0_14 = arith.constant 0 : index
      %14 = vector.load %arg3[%c0_13, %c0_14] : memref<1x256xf32, #tpu.memory_space<vmem>>, vector<1x256xf32>
      %15 = vector.broadcast %14 : vector<1x256xf32> to vector<8x256xf32>
      %16 = arith.addf %13, %15 : vector<8x256xf32>
      %cst_15 = arith.constant 0.000000e+00 : f32
      %17 = vector.broadcast %cst_15 : f32 to vector<8x256xf32>
      %18 = arith.maximumf %16, %17 : vector<8x256xf32>
      %c0_16 = arith.constant 0 : index
      %c0_17 = arith.constant 0 : index
      %19 = vector.load %arg4[%c0_16, %c0_17] : memref<256x512xf32, #tpu.memory_space<vmem>>, vector<256x512xf32>
      %cst_18 = arith.constant dense<0.000000e+00> : vector<8x512xf32>
      %20 = tpu.matmul %18, %19, %cst_18 {dimension_numbers = #tpu.dot_dimension_numbers<[1], [0], [0], [1], [0, 0, 1, 1], [], []>} : vector<8x256xf32>, vector<256x512xf32>, vector<8x512xf32> -> vector<8x512xf32>
      %c0_19 = arith.constant 0 : index
      %c0_20 = arith.constant 0 : index
      %21 = vector.load %arg5[%c0_19, %c0_20] : memref<1x512xf32, #tpu.memory_space<vmem>>, vector<1x512xf32>
      %22 = vector.broadcast %21 : vector<1x512xf32> to vector<8x512xf32>
      %23 = arith.addf %20, %22 : vector<8x512xf32>
      %cst_21 = arith.constant 0.000000e+00 : f32
      %24 = vector.broadcast %cst_21 : f32 to vector<8x512xf32>
      %25 = arith.maximumf %23, %24 : vector<8x512xf32>
      %c0_22 = arith.constant 0 : index
      %c0_23 = arith.constant 0 : index
      %26 = vector.load %arg9[%c0_22, %c0_23] : memref<8x512xf32, #tpu.memory_space<vmem>>, vector<8x512xf32>
      tpu.vector_store %arg9[%c0_22, %c0_23], %25 {strides = array<i32>} : memref<8x512xf32, #tpu.memory_space<vmem>>, vector<8x512xf32>,
    } else {
    }
    %c0 = arith.constant 0 : index
    %c0_1 = arith.constant 0 : index
    %3 = vector.load %arg9[%c0, %c0_1] : memref<8x512xf32, #tpu.memory_space<vmem>>, vector<8x512xf32>
    %c0_2 = arith.constant 0 : index
    %c0_3 = arith.constant 0 : index
    %4 = vector.load %arg6[%c0_2, %c0_3] : memref<512x128xf32, #tpu.memory_space<vmem>>, vector<512x128xf32>
    %cst = arith.constant dense<0.000000e+00> : vector<8x128xf32>
    %5 = tpu.matmul %3, %4, %cst {dimension_numbers = #tpu.dot_dimension_numbers<[1], [0], [0], [1], [0, 0, 1, 1], [], []>} : vector<8x512xf32>, vector<512x128xf32>, vector<8x128xf32> -> vector<8x128xf32>
    %c0_4 = arith.constant 0 : index
    %c0_5 = arith.constant 0 : index
    %6 = vector.load %arg7[%c0_4, %c0_5] : memref<1x128xf32, #tpu.memory_space<vmem>>, vector<1x128xf32>
    %7 = vector.broadcast %6 : vector<1x128xf32> to vector<8x128xf32>
    %8 = arith.addf %5, %7 : vector<8x128xf32>
    %9 = math.tanh %8 : vector<8x128xf32>
    %c0_6 = arith.constant 0 : index
    %c0_7 = arith.constant 0 : index
    %10 = vector.load %arg8[%c0_6, %c0_7] : memref<8x128xf32, #tpu.memory_space<vmem>>, vector<8x128xf32>
    tpu.vector_store %arg8[%c0_6, %c0_7], %9 {strides = array<i32>} : memref<8x128xf32, #tpu.memory_space<vmem>>, vector<8x128xf32>,
    return
  }
  func.func @transform_0(%arg0: i32) -> (i32, i32) {
    %c0_i32 = arith.constant 0 : i32
    %c0_i32_0 = arith.constant 0 : i32
    %c0_i32_1 = arith.constant 0 : i32
    return %c0_i32, %c0_i32_0 : i32, i32
  }
  func.func @transform_1(%arg0: i32) -> (i32, i32) {
    %c0_i32 = arith.constant 0 : i32
    %c0_i32_0 = arith.constant 0 : i32
    %c0_i32_1 = arith.constant 0 : i32
    return %c0_i32, %c0_i32_0 : i32, i32
  }
  func.func @transform_2(%arg0: i32) -> (i32, i32) {
    %c0_i32 = arith.constant 0 : i32
    %c0_i32_0 = arith.constant 0 : i32
    %c0_i32_1 = arith.constant 0 : i32
    return %c0_i32, %c0_i32_0 : i32, i32
  }
  func.func @transform_3(%arg0: i32) -> (i32, i32) {
    %c0_i32 = arith.constant 0 : i32
    %c0_i32_0 = arith.constant 0 : i32
    %c0_i32_1 = arith.constant 0 : i32
    return %c0_i32, %c0_i32_0 : i32, i32
  }
  func.func @transform_4(%arg0: i32) -> (i32, i32) {
    %c0_i32 = arith.constant 0 : i32
    %c0_i32_0 = arith.constant 0 : i32
    %c0_i32_1 = arith.constant 0 : i32
    return %c0_i32, %c0_i32_0 : i32, i32
  }
  func.func @transform_5(%arg0: i32) -> (i32, i32) {
    %c0_i32 = arith.constant 0 : i32
    %c0_i32_0 = arith.constant 0 : i32
    return %c0_i32, %arg0 : i32, i32
  }
  func.func @transform_6(%arg0: i32) -> (i32, i32) {
    %c0_i32 = arith.constant 0 : i32
    %c0_i32_0 = arith.constant 0 : i32
    return %c0_i32, %arg0 : i32, i32
  }
  func.func @transform_7(%arg0: i32) -> (i32, i32) {
    %c0_i32 = arith.constant 0 : i32
    %c0_i32_0 = arith.constant 0 : i32
    return %c0_i32, %arg0 : i32, i32
  }
}

</mosaic_0001>

<bundles_post_ra>
// kernel: tpu_custom_call.1
= control target key start
LH: loop header
LB: loop body
LE: loop exit
PB: predicated region body
PF: predicated region fallthrough
CT: control target
= control target key end

     0   :  { %s1781_s0 = inlined_call_operand.hbm [shape: f32[8,128], index: 0, kind: input, shape index: {}]   ;;  %s1782_s1 = inlined_call_operand.hbm [shape: f32[128,256], index: 1, kind: input, shape index: {}]   ;;  %s1783_s2 = inlined_call_operand.hbm [shape: f32[1,256], index: 2, kind: input, shape index: {}]   ;;  %s1784_s3 = inlined_call_operand.hbm [shape: f32[256,512], index: 3, kind: input, shape index: {}]   ;;  %s1785_s4 = inlined_call_operand.hbm [shape: f32[1,512], index: 4, kind: input, shape index: {}]   ;;  %s1786_s5 = inlined_call_operand.hbm [shape: f32[512,512], index: 5, kind: input, shape index: {}]   ;;  %s1787_s6 = inlined_call_operand.vmem [shape: f32[1,512], index: 6, kind: input, shape index: {}]   ;;  %s1788_s7 = inlined_call_operand.hbm [shape: f32[8,512], index: 7, kind: output, shape index: {}]  }
   0x1   :  { %1790 = sst [smem:[#allocation20_spill]] %s1781_s0 }
   0x2   :  { %1791 = sst [smem:[#allocation21_spill]] %s1782_s1 }
   0x3   :  { %12 = vsyncpa [#allocation4], 0 }
   0x4   :  { %13 = vsyncpa [#allocation7], 0 }
   0x5   :  { %14 = vsyncpa [#allocation10], 0 }
   0x6   :  { %15 = vsyncpa [#allocation13], 0 }
   0x7   :  { %17 = vsyncpa [#allocation13 + $0x1], 0 }
   0x8   :  { %18 = vsyncpa [#allocation5], 0 }
   0x9   :  { %20 = vsyncpa [#allocation5 + $0x1], 0  ;;  %s1519_s24 = smov 0   ;;  %s1521_s25 = smov 0  }
   0xa   :  { %s1523_s26 = smov 0   ;;  %s1525_s27 = smov 0  }
   0xb LB: > { %s1540_s28 = sadd.s32 4294967295, %s1466_s27   ;;  %s1079_s29 = sadd.s32 4294967294, %s1466_s27   ;;  %s1466_s27 = sphi %s1525_s27, %s1805_s27   ;;  %s1462_s26 = sphi %s1523_s26, %s1804_s26   ;;  %s1458_s25 = sphi %s1521_s25, %s1803_s25   ;;  %s1454_s24 = sphi %s1519_s24, %s1802_s24  }
   0xc   : > { %p151_p0 = scmp.ne.s32.totalorder %s1458_s25, %s1454_s24  ;;  %p152_p1 = scmp.eq.s32.totalorder %s1540_s28, 0 }
   0xd   : > { %p201_p2 = scmp.eq.s32.totalorder %s1540_s28, 3  ;;  %p207_p3 = scmp.eq.s32.totalorder %s1079_s29, 3 }
   0xe   : > { %p1549_p4 = por %p152_p1, %p151_p0  ;;  %p1080_p5 = scmp.ge.s32.totalorder %s1466_s27, 1 }
   0xf   : > { %p1554_p6 = por %p207_p3, %p151_p0  ;;  %p214_p7 = scmp.lt.s32.totalorder %s1466_s27, 5 }
  0x10   : > { %s1794_s1 = sld [smem:[#allocation21_spill]]  ;;  %s1468_s13 = smov [#allocation6]  }
  0x11   : > { %p1563_p9 = pnand %p1080_p5, %p214_p7  ;;  %s239_s14 = sshll.u32 %s1468_s13, 4  ;;  %s240_s14 = int_to_ptr.vmem [resolvable:$true] %s239_s14 }
  0x12   : > { %s263_s18 = sshll.u32 %s1784_s3, 4  ;;  %s1469_s19 = smov 256   ;;  %s264_s18 = int_to_ptr.hbm [resolvable:$true] %s263_s18 }
  0x13   : > { %p1126_p10 = pneg %p1563_p9  ;;  %s1470_s20 = smov 16  }
  0x14   : > { %s1471_s21 = smov [#allocation9]   ;;  %s1789_s23 = smov 512  }
  0x15   : > { %p1571_p11 = pnand %p1126_p10, %p152_p1  ;;  %s265_s22 = sshll.u32 %s1471_s21, 4  ;;  %s266_s22 = int_to_ptr.vmem [resolvable:$true] %s265_s22 }
  0x16   : > { %s237_s11 = sshll.u32 %s1794_s1, 4  ;;  %s1473_s29 = smov 32   ;;  %s238_s11 = int_to_ptr.hbm [resolvable:$true] %s237_s11 }
  0x17   : > { %1132 = dma.hbm_to_vmem [thread:$0]  (!%p1571_p11), %s238_s11, 4096, %s240_s14, [#allocation7], %s1469_s19, %s1469_s19, %s1470_s20  }
  0x18   : > { %1138 = dma.hbm_to_vmem [thread:$0]  (!%p1571_p11), %s264_s18, 16384, %s266_s22, [#allocation10], %s1789_s23, %s1789_s23, %s1473_s29  }
  0x19   : > { %s1797_s0 = sld [smem:[#allocation20_spill]]  ;;  %s1474_s16 = smov [#allocation3]  }
  0x1a   : > { %s228_s17 = sshll.u32 %s1474_s16, 4  ;;  %s252_s19 = sshll.u32 %s1783_s2, 4  ;;  %s229_s17 = int_to_ptr.vmem [resolvable:$true] %s228_s17  ;;  %s253_s19 = int_to_ptr.hbm [resolvable:$true] %s252_s19 }
  0x1b   : > { %s1475_s18 = smov [#allocation8]   ;;  %s278_s29 = sshll.u32 %s1785_s4, 4  ;;  %s279_s29 = int_to_ptr.hbm [resolvable:$true] %s278_s29 }
  0x1c   : > { %s254_s20 = sshll.u32 %s1475_s18, 4  ;;  %s1476_s9 = smov [#allocation11]   ;;  %s255_s20 = int_to_ptr.vmem [resolvable:$true] %s254_s20 }
  0x1d   : > { %1135 = dma.hbm_to_vmem [thread:$0]  (!%p1571_p11), %s253_s19, 32, %s255_s20, [#allocation7]  }
  0x1e   : > { %s280_s10 = sshll.u32 %s1476_s9, 4  ;;  %p145_p13 = scmp.ne.s32.totalorder %s1462_s26, %s1458_s25  ;;  %s281_s10 = int_to_ptr.vmem [resolvable:$true] %s280_s10 }
  0x1f   : > { %s226_s13 = sshll.u32 %s1797_s0, 4  ;;  %p146_p0 = scmp.eq.s32.totalorder %s1466_s27, 0  ;;  %s227_s13 = int_to_ptr.hbm [resolvable:$true] %s226_s13 }
  0x20   : > { %1129 = dma.hbm_to_vmem [thread:$0]  (!%p1571_p11), %s227_s13, 128, %s229_s17, [#allocation4]  }
  0x21   : > { %s1598_s13 = sadd.s32 1, %s1466_s27   ;;  %s138_s17 = sadd.s32 1, %s1462_s26 }
  0x22   : > { %1141 = dma.hbm_to_vmem [thread:$0]  (!%p1571_p11), %s279_s29, 64, %s281_s10, [#allocation10]  }
  0x23   : > { %s135_s16 = ssub.s32 %s1466_s27, %s1598_s13  ;;  %p1155_p3 = scmp.lt.s32.totalorder %s1466_s27, 4 }
  0x24   : > { %p136_p12 = scmp.eq.s32.totalorder %s135_s16, 0  ;;  %p147_p5 = por %p146_p0, %p145_p13 }
  0x25   : > { %p1614_p7 = por %p201_p2, %p145_p13  ;;  %s291_s19 = sand.u32 1, %s1462_s26  }
  0x26   : > { %s1610_s11 = scalar_select %p136_p12, %s1462_s26, %s138_s17  }
  0x27   : > { %s1088_s18 = sshll.u32 %s1466_s27, 3  ;;  %s1087_s15 = sshll.u32 %s291_s19, 9 }
  0x28   : > { %s299_s22 = scalar_lea.hbm %s1786_s5, %s1088_s18  ;;  %s295_s9 = scalar_lea.vmem [#allocation12], %s1087_s15 }
  0x29   : > { %s300_s29 = sshll.u32 %s299_s22, 4  ;;  %s302_s10 = sshll.u32 %s295_s9, 4  ;;  %s301_s29 = int_to_ptr.hbm [resolvable:$true] %s300_s29  ;;  %s303_s10 = int_to_ptr.vmem [resolvable:$true] %s302_s10 }
  0x2a   : > { %p1625_p10 = pnand %p1155_p3, %p147_p5  ;;  %s292_s17 = scalar_lea.sflag [#allocation13], %s291_s19 }
  0x2b   : > { %s1358_s23 = sshra.s32 %s301_s29, 4  ;;  %s1365_s20 = scalar_lea.hbm %s1786_s5, 2048  ;;  %s1359_s23 = int_to_ptr.hbm [resolvable:$true] %s1358_s23 }
  0x2c   : > { %s1360_s0 = scalar_lea.hbm %s1359_s23, 512  ;;  %p1362_p11 = pneg %p1625_p10 }
  0x2d   : > { %p1361_p2 = scmp.ne.s32.totalorder %s1359_s23, %s1360_s0  ;;  %p1366_p0 = scmp.lt.s32.totalorder %s1359_s23, %s1786_s5 }
  0x2e   : > { %p1367_p3 = scmp.lt.s32.totalorder %s1365_s20, %s1360_s0 }
  0x2f   : > { %p1363_p12 = pnand %p1362_p11, %p1361_p2 }
  0x30   : > { %p1368_p5 = por %p1367_p3, %p1366_p0 }
  0x31   : > { %p1364_p13 = pneg %p1363_p12 }
  0x33   : > { %p1369_p8 = pnand %p1368_p5, %p1364_p13 }
  0x35   : > { %1372 = shalt.err (!%p1369_p8)
}
  0x36   : > { %s1477_s19 = smov 128   ;;  %s1478_s9 = smov 8  }
  0x37   : > { %s1800_s1 = smov 512   ;;  %320 = sbr.rel (%p1563_p9) target bundleno = 565 (0x235), region = 48 }
  0x38   : > { %1145 = dma.hbm_to_vmem [thread:$0]  (!%p1625_p10), %s301_s29, 8192, %s303_s10, %s292_s17, %s1800_s1, %s1477_s19, %s1478_s9  }
  0x3c   : > { %1433 = dma.done.wait (%p152_p1), [#allocation4], 128  }
  0x3d   : > { %1435 = vsyncadd (%p152_p1), [#allocation4], 4294967168 }
  0x3e   : > { %1437 = dma.done.wait (%p152_p1), [#allocation7], 4128  }
  0x3f   : > { %1439 = vsyncadd (%p152_p1), [#allocation7], 4294963168 }
  0x40   : > { %1441 = dma.done.wait (%p152_p1), [#allocation10], 16448  }
  0x41   : > { %1443 = vsyncadd (%p152_p1), [#allocation10], 4294950848  ;;  %s1655_s0 = sand.u32 1, %s1458_s25  }
  0x42   : > { %s1095_s1 = sshll.u32 %s1655_s0, 9  ;;  %s348_s12 = scalar_lea.sflag [#allocation13], %s1655_s0 }
  0x43   : > { %s1659_s23 = scalar_lea.vmem [#allocation12], %s1095_s1 }
  0x44   : > { %1445 = dma.done.wait (%p1549_p4), %s348_s12, 8192  }
  0x45   : > { %1447 = vsyncadd (%p1549_p4), %s348_s12, 4294959104  ;;  %s1096_s29 = sshll.u32 %s1655_s0, 3  ;;  %p386_p1 = scmp.lt.s32.totalorder %s1540_s28, 3 }
  0x46   : > { %s1674_s15 = scalar_lea.vmem [#allocation14], %s1096_s29  ;;  %p1801_p8 = scmp.ne.s32.totalorder %s1540_s28, 0 }
  0x47   : > { %s1668_s10 = scalar_select %p386_p1, %s1540_s28, 3 }
  0x48   : > { %392 = sbr.rel (%p1801_p8) target bundleno = 386 (0x182), region = 76 }
  0x49   : > { %s388_s18 = scalar_lea.vmem %s1787_s6, %s1668_s10 }
  0x4d   : > { %v424_v0 = vld [vmem:[#allocation6 + $0xf0] sm:$0xff]  ;;  %v425_v1 = vld [vmem:[#allocation6 + $0xf8] sm:$0xff]  ;;  %v422_v2 = vld [vmem:[#allocation6 + $0xe0] sm:$0xff] }
  0x4e   : > { %432 = vmatpush.msra.mxu0 %v424_v0  ;;  %452 = vmatpush.msra.mxu1 %v425_v1  ;;  %v423_v3 = vld [vmem:[#allocation6 + $0xe8] sm:$0xff]  ;;  %v420_v4 = vld [vmem:[#allocation6 + $0xd0] sm:$0xff]  ;;  %v421_v5 = vld [vmem:[#allocation6 + $0xd8] sm:$0xff] }
  0x4f   : > { %v418_v6 = vld [vmem:[#allocation6 + $0xc0] sm:$0xff]  ;;  %v419_v7 = vld [vmem:[#allocation6 + $0xc8] sm:$0xff]  ;;  %v416_v8 = vld [vmem:[#allocation6 + $0xb0] sm:$0xff] }
  0x50   : > { %433 = vmatpush.msra.mxu0 %v422_v2  ;;  %453 = vmatpush.msra.mxu1 %v423_v3  ;;  %v417_v9 = vld [vmem:[#allocation6 + $0xb8] sm:$0xff]  ;;  %v414_v10 = vld [vmem:[#allocation6 + $0xa0] sm:$0xff]  ;;  %v415_v11 = vld [vmem:[#allocation6 + $0xa8] sm:$0xff] }
  0x51   : > { %v412_v12 = vld [vmem:[#allocation6 + $0x90] sm:$0xff]  ;;  %v413_v13 = vld [vmem:[#allocation6 + $0x98] sm:$0xff]  ;;  %v410_v14 = vld [vmem:[#allocation6 + $0x80] sm:$0xff] }
  0x52   : > { %434 = vmatpush.msra.mxu0 %v420_v4  ;;  %454 = vmatpush.msra.mxu1 %v421_v5  ;;  %v534_v15 = vld [vmem:[#allocation9 + $0x1e0] sm:$0xff]  ;;  %v408_v21 = vld [vmem:[#allocation6 + $0x70] sm:$0xff]  ;;  %v409_v22 = vld [vmem:[#allocation6 + $0x78] sm:$0xff] }
  0x53   : > { %v598_v16 = vld [vmem:[#allocation9 + $0x3e0] sm:$0xff]  ;;  %612 = vmatpush.msra.mxu2 %v534_v15  ;;  %v404_v30 = vld [vmem:[#allocation6 + $0x50] sm:$0xff]  ;;  %v405_v31 = vld [vmem:[#allocation6 + $0x58] sm:$0xff] }
  0x54   : > { %435 = vmatpush.msra.mxu0 %v418_v6  ;;  %455 = vmatpush.msra.mxu1 %v419_v7  ;;  %v411_v17 = vld [vmem:[#allocation6 + $0x88] sm:$0xff]  ;;  %v406_v26 = vld [vmem:[#allocation6 + $0x60] sm:$0xff]  ;;  %v400_v38 = vld [vmem:[#allocation6 + $0x30] sm:$0xff] }
  0x55   : > { %632 = vmatpush.msra.mxu3 %v598_v16  ;;  %v530_v18 = vld [vmem:[#allocation9 + $0x1c0] sm:$0xff]  ;;  %v401_v39 = vld [vmem:[#allocation6 + $0x38] sm:$0xff]  ;;  %v396_v46 = vld [vmem:[#allocation6 + $0x10] sm:$0xff] }
  0x56   : > { %436 = vmatpush.msra.mxu0 %v416_v8  ;;  %456 = vmatpush.msra.mxu1 %v417_v9  ;;  %v594_v19 = vld [vmem:[#allocation9 + $0x3c0] sm:$0xff]  ;;  %v397_v47 = vld [vmem:[#allocation6 + $0x18] sm:$0xff]  ;;  %v535_v53 = vld [vmem:[#allocation9 + $0x1e8] sm:$0xff] }
  0x57   : > { %v526_v20 = vld [vmem:[#allocation9 + $0x1a0] sm:$0xff]  ;;  %613 = vmatpush.msra.mxu2 %v530_v18  ;;  %633 = vmatpush.msra.mxu3 %v594_v19  ;;  %v393_v52 = vld [vmem:[#allocation3] sm:$0xff]  ;;  %v599_v54 = vld [vmem:[#allocation9 + $0x3e8] sm:$0xff] }
  0x58   : > { %437 = vmatpush.msra.mxu0 %v414_v10  ;;  %457 = vmatpush.msra.mxu1 %v415_v11  ;;  %v590_v23 = vld [vmem:[#allocation9 + $0x3a0] sm:$0xff]  ;;  %v531_v57 = vld [vmem:[#allocation9 + $0x1c8] sm:$0xff]  ;;  %v536_v15 = vld [vmem:[#allocation9 + $0x1f0] sm:$0xff] }
  0x59   : > { %v522_v24 = vld [vmem:[#allocation9 + $0x180] sm:$0xff]  ;;  %614 = vmatpush.msra.mxu2 %v526_v20  ;;  %634 = vmatpush.msra.mxu3 %v590_v23  ;;  %v595_v58 = vld [vmem:[#allocation9 + $0x3c8] sm:$0xff]  ;;  %v600_v16 = vld [vmem:[#allocation9 + $0x3f0] sm:$0xff] }
  0x5a   : > { %438 = vmatpush.msra.mxu0 %v412_v12  ;;  %458 = vmatpush.msra.mxu1 %v413_v13  ;;  %v586_v25 = vld [vmem:[#allocation9 + $0x380] sm:$0xff]  ;;  %v527_v61 = vld [vmem:[#allocation9 + $0x1a8] sm:$0xff]  ;;  %v532_v19 = vld [vmem:[#allocation9 + $0x1d0] sm:$0xff] }
  0x5b   : > { %v407_v27 = vld [vmem:[#allocation6 + $0x68] sm:$0xff]  ;;  %615 = vmatpush.msra.mxu2 %v522_v24  ;;  %635 = vmatpush.msra.mxu3 %v586_v25  ;;  %v402_v34 = vld [vmem:[#allocation6 + $0x40] sm:$0xff]  ;;  %v596_v20 = vld [vmem:[#allocation9 + $0x3d0] sm:$0xff] }
  0x5c   : > { %439 = vmatpush.msra.mxu0 %v410_v14  ;;  %459 = vmatpush.msra.mxu1 %v411_v17  ;;  %v518_v28 = vld [vmem:[#allocation9 + $0x160] sm:$0xff]  ;;  %v591_v62 = vld [vmem:[#allocation9 + $0x3a8] sm:$0xff]  ;;  %v528_v23 = vld [vmem:[#allocation9 + $0x1b0] sm:$0xff] }
  0x5d   : > { %v582_v29 = vld [vmem:[#allocation9 + $0x360] sm:$0xff]  ;;  %616 = vmatpush.msra.mxu2 %v518_v28  ;;  %v523_v1 = vld [vmem:[#allocation9 + $0x188] sm:$0xff]  ;;  %v592_v24 = vld [vmem:[#allocation9 + $0x3b0] sm:$0xff] }
  0x5e   : > { %440 = vmatpush.msra.mxu0 %v408_v21  ;;  %460 = vmatpush.msra.mxu1 %v409_v22  ;;  %v514_v32 = vld [vmem:[#allocation9 + $0x140] sm:$0xff]  ;;  %v587_v2 = vld [vmem:[#allocation9 + $0x388] sm:$0xff]  ;;  %v588_v28 = vld [vmem:[#allocation9 + $0x390] sm:$0xff] }
  0x5f   : > { %v578_v33 = vld [vmem:[#allocation9 + $0x340] sm:$0xff]  ;;  %636 = vmatpush.msra.mxu3 %v582_v29  ;;  %617 = vmatpush.msra.mxu2 %v514_v32  ;;  %v519_v5 = vld [vmem:[#allocation9 + $0x168] sm:$0xff]  ;;  %v584_v32 = vld [vmem:[#allocation9 + $0x370] sm:$0xff] }
  0x60   : > { %441 = vmatpush.msra.mxu0 %v406_v26  ;;  %461 = vmatpush.msra.mxu1 %v407_v27  ;;  %v403_v35 = vld [vmem:[#allocation6 + $0x48] sm:$0xff]  ;;  %v398_v42 = vld [vmem:[#allocation6 + $0x20] sm:$0xff]  ;;  %v524_v27 = vld [vmem:[#allocation9 + $0x190] sm:$0xff] }
  0x61   : > { %v510_v36 = vld [vmem:[#allocation9 + $0x120] sm:$0xff]  ;;  %637 = vmatpush.msra.mxu3 %v578_v33  ;;  %v583_v6 = vld [vmem:[#allocation9 + $0x368] sm:$0xff] }
  0x62   : > { %442 = vmatpush.msra.mxu0 %v404_v30  ;;  %462 = vmatpush.msra.mxu1 %v405_v31  ;;  %v574_v37 = vld [vmem:[#allocation9 + $0x320] sm:$0xff]  ;;  %v515_v9 = vld [vmem:[#allocation9 + $0x148] sm:$0xff]  ;;  %v520_v31 = vld [vmem:[#allocation9 + $0x170] sm:$0xff] }
  0x63   : > { %v506_v40 = vld [vmem:[#allocation9 + $0x100] sm:$0xff]  ;;  %618 = vmatpush.msra.mxu2 %v510_v36  ;;  %638 = vmatpush.msra.mxu3 %v574_v37  ;;  %v579_v10 = vld [vmem:[#allocation9 + $0x348] sm:$0xff]  ;;  %v580_v36 = vld [vmem:[#allocation9 + $0x350] sm:$0xff] }
  0x64   : > { %443 = vmatpush.msra.mxu0 %v402_v34  ;;  %463 = vmatpush.msra.mxu1 %v403_v35  ;;  %v570_v41 = vld [vmem:[#allocation9 + $0x300] sm:$0xff]  ;;  %v511_v13 = vld [vmem:[#allocation9 + $0x128] sm:$0xff]  ;;  %v516_v35 = vld [vmem:[#allocation9 + $0x150] sm:$0xff] }
  0x65   : > { %v399_v43 = vld [vmem:[#allocation6 + $0x28] sm:$0xff]  ;;  %619 = vmatpush.msra.mxu2 %v506_v40  ;;  %639 = vmatpush.msra.mxu3 %v570_v41  ;;  %v394_v50 = vld [vmem:[#allocation6] sm:$0xff]  ;;  %v576_v40 = vld [vmem:[#allocation9 + $0x330] sm:$0xff] }
  0x66   : > { %444 = vmatpush.msra.mxu0 %v400_v38  ;;  %464 = vmatpush.msra.mxu1 %v401_v39  ;;  %v502_v44 = vld [vmem:[#allocation9 + $0xe0] sm:$0xff]  ;;  %v575_v14 = vld [vmem:[#allocation9 + $0x328] sm:$0xff]  ;;  %v512_v39 = vld [vmem:[#allocation9 + $0x130] sm:$0xff] }
  0x67   : > { %v566_v45 = vld [vmem:[#allocation9 + $0x2e0] sm:$0xff]  ;;  %620 = vmatpush.msra.mxu2 %v502_v44  ;;  %v507_v17 = vld [vmem:[#allocation9 + $0x108] sm:$0xff]  ;;  %v572_v44 = vld [vmem:[#allocation9 + $0x310] sm:$0xff] }
  0x68   : > { %445 = vmatpush.msra.mxu0 %v398_v42  ;;  %465 = vmatpush.msra.mxu1 %v399_v43  ;;  %v498_v48 = vld [vmem:[#allocation9 + $0xc0] sm:$0xff]  ;;  %v571_v18 = vld [vmem:[#allocation9 + $0x308] sm:$0xff]  ;;  %v508_v43 = vld [vmem:[#allocation9 + $0x110] sm:$0xff] }
  0x69   : > { %v562_v49 = vld [vmem:[#allocation9 + $0x2c0] sm:$0xff]  ;;  %640 = vmatpush.msra.mxu3 %v566_v45  ;;  %621 = vmatpush.msra.mxu2 %v498_v48  ;;  %v503_v21 = vld [vmem:[#allocation9 + $0xe8] sm:$0xff]  ;;  %v568_v48 = vld [vmem:[#allocation9 + $0x2f0] sm:$0xff] }
  0x6a   : > { %v395_v51 = vld [vmem:[#allocation6 + $0x8] sm:$0xff]  ;;  %446 = vmatpush.msra.mxu0 %v396_v46  ;;  %466 = vmatpush.msra.mxu1 %v397_v47  ;;  %v504_v47 = vld [vmem:[#allocation9 + $0xf0] sm:$0xff] }
  0x6b   : > { %641 = vmatpush.msra.mxu3 %v562_v49  ;;  %v494_v55 = vld [vmem:[#allocation9 + $0xa0] sm:$0xff]  ;;  %v567_v22 = vld [vmem:[#allocation9 + $0x2e8] sm:$0xff] }
  0x6c   : > { %447 = vmatpush.msra.mxu0 %v394_v50  ;;  %467 = vmatpush.msra.mxu1 %v395_v51  ;;  %v558_v56 = vld [vmem:[#allocation9 + $0x2a0] sm:$0xff]  ;;  %v499_v25 = vld [vmem:[#allocation9 + $0xc8] sm:$0xff]  ;;  %v537_v51 = vld [vmem:[#allocation9 + $0x1f8] sm:$0xff] }
  0x6d   : > { %448 = vmatmul.f32.vlgmr.msra.gmra.mxu0 %v393_v52  ;;  %468 = vmatmul.f32.vlgmr.msra.gmra.mxu1 %v393_v52  ;;  %v490_v59 = vld [vmem:[#allocation9 + $0x80] sm:$0xff]  ;;  %v563_v26 = vld [vmem:[#allocation9 + $0x2c8] sm:$0xff]  ;;  %v601_v52 = vld [vmem:[#allocation9 + $0x3f8] sm:$0xff] }
  0x6e   : > { %652 = vmatpush.msrb.mxu0 %v535_v53  ;;  %672 = vmatpush.msrb.mxu1 %v599_v54  ;;  %v554_v60 = vld [vmem:[#allocation9 + $0x280] sm:$0xff]  ;;  %v495_v29 = vld [vmem:[#allocation9 + $0xa8] sm:$0xff]  ;;  %v533_v53 = vld [vmem:[#allocation9 + $0x1d8] sm:$0xff] }
  0x6f   : > { %622 = vmatpush.msra.mxu2 %v494_v55  ;;  %642 = vmatpush.msra.mxu3 %v558_v56  ;;  %v486_v63 = vld [vmem:[#allocation9 + $0x60] sm:$0xff]  ;;  %v559_v30 = vld [vmem:[#allocation9 + $0x2a8] sm:$0xff]  ;;  %v597_v54 = vld [vmem:[#allocation9 + $0x3d8] sm:$0xff] }
  0x70   : > { %653 = vmatpush.msrb.mxu0 %v531_v57  ;;  %673 = vmatpush.msrb.mxu1 %v595_v58  ;;  %v550_v0 = vld [vmem:[#allocation9 + $0x260] sm:$0xff]  ;;  %v491_v33 = vld [vmem:[#allocation9 + $0x88] sm:$0xff]  ;;  %v529_v55 = vld [vmem:[#allocation9 + $0x1b8] sm:$0xff] }
  0x71   : > { %623 = vmatpush.msra.mxu2 %v490_v59  ;;  %643 = vmatpush.msra.mxu3 %v554_v60  ;;  %v482_v3 = vld [vmem:[#allocation9 + $0x40] sm:$0xff]  ;;  %v555_v34 = vld [vmem:[#allocation9 + $0x288] sm:$0xff]  ;;  %v593_v56 = vld [vmem:[#allocation9 + $0x3b8] sm:$0xff] }
  0x72   : > { %654 = vmatpush.msrb.mxu0 %v527_v61  ;;  %674 = vmatpush.msrb.mxu1 %v591_v62  ;;  %v546_v4 = vld [vmem:[#allocation9 + $0x240] sm:$0xff]  ;;  %v487_v37 = vld [vmem:[#allocation9 + $0x68] sm:$0xff]  ;;  %v525_v57 = vld [vmem:[#allocation9 + $0x198] sm:$0xff] }
  0x73   : > { %624 = vmatpush.msra.mxu2 %v486_v63  ;;  %644 = vmatpush.msra.mxu3 %v550_v0  ;;  %v478_v7 = vld [vmem:[#allocation9 + $0x20] sm:$0xff]  ;;  %v551_v38 = vld [vmem:[#allocation9 + $0x268] sm:$0xff]  ;;  %v589_v58 = vld [vmem:[#allocation9 + $0x398] sm:$0xff] }
  0x74   : > { %655 = vmatpush.msrb.mxu0 %v523_v1  ;;  %675 = vmatpush.msrb.mxu1 %v587_v2  ;;  %v542_v8 = vld [vmem:[#allocation9 + $0x220] sm:$0xff]  ;;  %v483_v41 = vld [vmem:[#allocation9 + $0x48] sm:$0xff]  ;;  %v521_v59 = vld [vmem:[#allocation9 + $0x178] sm:$0xff] }
  0x75   : > { %625 = vmatpush.msra.mxu2 %v482_v3  ;;  %645 = vmatpush.msra.mxu3 %v546_v4  ;;  %v474_v11 = vld [vmem:[#allocation9] sm:$0xff]  ;;  %v547_v42 = vld [vmem:[#allocation9 + $0x248] sm:$0xff]  ;;  %v585_v60 = vld [vmem:[#allocation9 + $0x378] sm:$0xff] }
  0x76   : > { %656 = vmatpush.msrb.mxu0 %v519_v5  ;;  %676 = vmatpush.msrb.mxu1 %v583_v6  ;;  %v538_v12 = vld [vmem:[#allocation9 + $0x200] sm:$0xff]  ;;  %v479_v45 = vld [vmem:[#allocation9 + $0x28] sm:$0xff]  ;;  %v517_v61 = vld [vmem:[#allocation9 + $0x158] sm:$0xff] }
  0x77   : > { %626 = vmatpush.msra.mxu2 %v478_v7  ;;  %646 = vmatpush.msra.mxu3 %v542_v8  ;;  %v543_v46 = vld [vmem:[#allocation9 + $0x228] sm:$0xff]  ;;  %v581_v62 = vld [vmem:[#allocation9 + $0x358] sm:$0xff]  ;;  %v500_v5 = vld [vmem:[#allocation9 + $0xd0] sm:$0xff] }
  0x78   : > { %657 = vmatpush.msrb.mxu0 %v515_v9  ;;  %677 = vmatpush.msrb.mxu1 %v579_v10  ;;  %v475_v49 = vld [vmem:[#allocation9 + $0x8] sm:$0xff]  ;;  %v513_v63 = vld [vmem:[#allocation9 + $0x138] sm:$0xff]  ;;  %v564_v6 = vld [vmem:[#allocation9 + $0x2d0] sm:$0xff] }
  0x79   : > { %627 = vmatpush.msra.mxu2 %v474_v11  ;;  %647 = vmatpush.msra.mxu3 %v538_v12  ;;  %v539_v50 = vld [vmem:[#allocation9 + $0x208] sm:$0xff]  ;;  %v577_v0 = vld [vmem:[#allocation9 + $0x338] sm:$0xff]  ;;  %v496_v9 = vld [vmem:[#allocation9 + $0xb0] sm:$0xff] }
  0x7a   : > { %658 = vmatpush.msrb.mxu0 %v511_v13  ;;  %678 = vmatpush.msrb.mxu1 %v575_v14  ;;  %v509_v1 = vld [vmem:[#allocation9 + $0x118] sm:$0xff]  ;;  %v560_v10 = vld [vmem:[#allocation9 + $0x2b0] sm:$0xff] }
  0x7b   : > { %692 = vmatpush.msrb.mxu2 %v536_v15  ;;  %712 = vmatpush.msrb.mxu3 %v600_v16  ;;  %v573_v2 = vld [vmem:[#allocation9 + $0x318] sm:$0xff]  ;;  %v492_v13 = vld [vmem:[#allocation9 + $0x90] sm:$0xff] }
  0x7c   : > { %659 = vmatpush.msrb.mxu0 %v507_v17  ;;  %679 = vmatpush.msrb.mxu1 %v571_v18  ;;  %v505_v3 = vld [vmem:[#allocation9 + $0xf8] sm:$0xff]  ;;  %v556_v14 = vld [vmem:[#allocation9 + $0x290] sm:$0xff] }
  0x7d   : > { %693 = vmatpush.msrb.mxu2 %v532_v19  ;;  %713 = vmatpush.msrb.mxu3 %v596_v20  ;;  %v569_v4 = vld [vmem:[#allocation9 + $0x2f8] sm:$0xff]  ;;  %v488_v17 = vld [vmem:[#allocation9 + $0x70] sm:$0xff] }
  0x7e   : > { %660 = vmatpush.msrb.mxu0 %v503_v21  ;;  %680 = vmatpush.msrb.mxu1 %v567_v22  ;;  %v501_v7 = vld [vmem:[#allocation9 + $0xd8] sm:$0xff]  ;;  %v552_v18 = vld [vmem:[#allocation9 + $0x270] sm:$0xff] }
  0x7f   : > { %694 = vmatpush.msrb.mxu2 %v528_v23  ;;  %714 = vmatpush.msrb.mxu3 %v592_v24  ;;  %v565_v8 = vld [vmem:[#allocation9 + $0x2d8] sm:$0xff]  ;;  %v484_v21 = vld [vmem:[#allocation9 + $0x50] sm:$0xff] }
  0x80   : > { %661 = vmatpush.msrb.mxu0 %v499_v25  ;;  %681 = vmatpush.msrb.mxu1 %v563_v26  ;;  %v497_v11 = vld [vmem:[#allocation9 + $0xb8] sm:$0xff]  ;;  %v548_v22 = vld [vmem:[#allocation9 + $0x250] sm:$0xff] }
  0x81   : > { %695 = vmatpush.msrb.mxu2 %v524_v27  ;;  %715 = vmatpush.msrb.mxu3 %v588_v28  ;;  %v561_v12 = vld [vmem:[#allocation9 + $0x2b8] sm:$0xff]  ;;  %v480_v25 = vld [vmem:[#allocation9 + $0x30] sm:$0xff] }
  0x82   : > { %662 = vmatpush.msrb.mxu0 %v495_v29  ;;  %682 = vmatpush.msrb.mxu1 %v559_v30  ;;  %v493_v15 = vld [vmem:[#allocation9 + $0x98] sm:$0xff]  ;;  %v544_v26 = vld [vmem:[#allocation9 + $0x230] sm:$0xff] }
  0x83   : > { %696 = vmatpush.msrb.mxu2 %v520_v31  ;;  %716 = vmatpush.msrb.mxu3 %v584_v32  ;;  %v557_v16 = vld [vmem:[#allocation9 + $0x298] sm:$0xff]  ;;  %v476_v29 = vld [vmem:[#allocation9 + $0x10] sm:$0xff] }
  0x84   : > { %663 = vmatpush.msrb.mxu0 %v491_v33  ;;  %683 = vmatpush.msrb.mxu1 %v555_v34  ;;  %v489_v19 = vld [vmem:[#allocation9 + $0x78] sm:$0xff]  ;;  %v540_v30 = vld [vmem:[#allocation9 + $0x210] sm:$0xff] }
  0x85   : > { %697 = vmatpush.msrb.mxu2 %v516_v35  ;;  %717 = vmatpush.msrb.mxu3 %v580_v36  ;;  %v553_v20 = vld [vmem:[#allocation9 + $0x278] sm:$0xff] }
  0x86   : > { %664 = vmatpush.msrb.mxu0 %v487_v37  ;;  %684 = vmatpush.msrb.mxu1 %v551_v38  ;;  %v485_v23 = vld [vmem:[#allocation9 + $0x58] sm:$0xff] }
  0x87   : > { %698 = vmatpush.msrb.mxu2 %v512_v39  ;;  %718 = vmatpush.msrb.mxu3 %v576_v40  ;;  %v549_v24 = vld [vmem:[#allocation9 + $0x258] sm:$0xff] }
  0x88   : > { %665 = vmatpush.msrb.mxu0 %v483_v41  ;;  %685 = vmatpush.msrb.mxu1 %v547_v42  ;;  %v481_v27 = vld [vmem:[#allocation9 + $0x38] sm:$0xff]  ;;  %v602_v42 = vld [vmem:[#allocation11] sm:$0xf] }
  0x89   : > { %699 = vmatpush.msrb.mxu2 %v508_v43  ;;  %719 = vmatpush.msrb.mxu3 %v572_v44  ;;  %v545_v28 = vld [vmem:[#allocation9 + $0x238] sm:$0xff]  ;;  %v605_v43 = vperm.slane %v602_v42, 1 }
  0x8a   : > { %666 = vmatpush.msrb.mxu0 %v479_v45  ;;  %686 = vmatpush.msrb.mxu1 %v543_v46  ;;  %v477_v31 = vld [vmem:[#allocation9 + $0x18] sm:$0xff] }
  0x8b   : > { %700 = vmatpush.msrb.mxu2 %v504_v47  ;;  %720 = vmatpush.msrb.mxu3 %v568_v48  ;;  %v541_v32 = vld [vmem:[#allocation9 + $0x218] sm:$0xff]  ;;  %v604_v47 = vperm.slane %v602_v42, 0 }
  0x8c   : > { %667 = vmatpush.msrb.mxu0 %v475_v49  ;;  %687 = vmatpush.msrb.mxu1 %v539_v50  ;;  %v426_v33 = vld [vmem:[#allocation8] sm:$0x3] }
  0x8d   : > { %701 = vmatpush.msrb.mxu2 %v500_v5  ;;  %721 = vmatpush.msrb.mxu3 %v564_v6  ;;  %v428_v34 = vperm.slane %v426_v33, 0  ;;  %v429_v35 = vperm.slane %v426_v33, 1 }
  0x8e   : > { %732 = vmatpush.msra.mxu0 %v537_v51  ;;  %752 = vmatpush.msra.mxu1 %v601_v52  ;;  %v607_v52 = vperm.slane %v602_v42, 3 }
  0x8f   : > { %702 = vmatpush.msrb.mxu2 %v496_v9  ;;  %722 = vmatpush.msrb.mxu3 %v560_v10 }
  0x90   : > { %733 = vmatpush.msra.mxu0 %v533_v53  ;;  %753 = vmatpush.msra.mxu1 %v597_v54 }
  0x91   : > { %703 = vmatpush.msrb.mxu2 %v492_v13  ;;  %723 = vmatpush.msrb.mxu3 %v556_v14 }
  0x92   : > { %734 = vmatpush.msra.mxu0 %v529_v55  ;;  %754 = vmatpush.msra.mxu1 %v593_v56 }
  0x93   : > { %704 = vmatpush.msrb.mxu2 %v488_v17  ;;  %724 = vmatpush.msrb.mxu3 %v552_v18 }
  0x94   : > { %735 = vmatpush.msra.mxu0 %v525_v57  ;;  %755 = vmatpush.msra.mxu1 %v589_v58 }
  0x95   : > { %705 = vmatpush.msrb.mxu2 %v484_v21  ;;  %725 = vmatpush.msrb.mxu3 %v548_v22 }
  0x96   : > { %736 = vmatpush.msra.mxu0 %v521_v59  ;;  %756 = vmatpush.msra.mxu1 %v585_v60  ;;  %v606_v59 = vperm.slane %v602_v42, 2 }
  0x97   : > { %706 = vmatpush.msrb.mxu2 %v480_v25  ;;  %726 = vmatpush.msrb.mxu3 %v544_v26 }
  0x98   : > { %737 = vmatpush.msra.mxu0 %v517_v61  ;;  %757 = vmatpush.msra.mxu1 %v581_v62 }
  0x99   : > { %707 = vmatpush.msrb.mxu2 %v476_v29  ;;  %727 = vmatpush.msrb.mxu3 %v540_v30 }
  0x9a   : > { %738 = vmatpush.msra.mxu0 %v513_v63  ;;  %758 = vmatpush.msra.mxu1 %v577_v0 }
  0x9c   : > { %739 = vmatpush.msra.mxu0 %v509_v1  ;;  %759 = vmatpush.msra.mxu1 %v573_v2 }
  0x9e   : > { %740 = vmatpush.msra.mxu0 %v505_v3  ;;  %760 = vmatpush.msra.mxu1 %v569_v4 }
  0xa0   : > { %741 = vmatpush.msra.mxu0 %v501_v7  ;;  %761 = vmatpush.msra.mxu1 %v565_v8 }
  0xa2   : > { %742 = vmatpush.msra.mxu0 %v497_v11  ;;  %762 = vmatpush.msra.mxu1 %v561_v12 }
  0xa4   : > { %743 = vmatpush.msra.mxu0 %v493_v15  ;;  %763 = vmatpush.msra.mxu1 %v557_v16 }
  0xa6   : > { %744 = vmatpush.msra.mxu0 %v489_v19  ;;  %764 = vmatpush.msra.mxu1 %v553_v20 }
  0xa8   : > { %745 = vmatpush.msra.mxu0 %v485_v23  ;;  %765 = vmatpush.msra.mxu1 %v549_v24 }
  0xaa   : > { %746 = vmatpush.msra.mxu0 %v481_v27  ;;  %766 = vmatpush.msra.mxu1 %v545_v28 }
  0xac   : > { %747 = vmatpush.msra.mxu0 %v477_v31  ;;  %767 = vmatpush.msra.mxu1 %v541_v32 }
  0xea   : > { %v449_v36 = vpop.f32.mrf.mxu0  ;;  %v469_v37 = vpop.f32.mrf.mxu1 }
  0xeb   : > { %v450_v38 = vadd.f32 %v449_v36, %v428_v34  ;;  %v470_v39 = vadd.f32 %v469_v37, %v429_v35 }
  0xed   : > { %v472_v40 = vmax.f32 %v450_v38, 0.0  ;;  %v473_v41 = vmax.f32 %v470_v39, 0.0 }
  0xef   : > { %628 = vmatmul.f32.vlgmr.msra.gmra.mxu2 %v472_v40  ;;  %648 = vmatmul.f32.vlgmr.msra.gmra.mxu3 %v473_v41 }
  0xf0   : > { %668 = vmatmul.f32.vlgmr.msrb.gmra.mxu0 %v472_v40  ;;  %688 = vmatmul.f32.vlgmr.msrb.gmra.mxu1 %v473_v41 }
  0xf7   : > { %708 = vmatmul.f32.vlgmr.msrb.gmra.mxu2 %v472_v40  ;;  %728 = vmatmul.f32.vlgmr.msrb.gmra.mxu3 %v473_v41 }
  0xf8   : > { %748 = vmatmul.f32.vlgmr.msra.gmra.mxu0 %v472_v40  ;;  %768 = vmatmul.f32.vlgmr.msra.gmra.mxu1 %v473_v41 }
 0x16d   : > { %v669_v44 = vpop.f32.mrf.mxu0  ;;  %v689_v45 = vpop.f32.mrf.mxu1 }
 0x16e   : > { %v670_v46 = vadd.f32 %v669_v44, %v605_v43 }
 0x170   : > { %v690_v48 = vadd.f32 %v689_v45, %v670_v46 }
 0x172   : > { %v773_v49 = vmax.f32 %v690_v48, 0.0  ;;  %v629_v50 = vpop.f32.mrf.mxu2  ;;  %v649_v51 = vpop.f32.mrf.mxu3 }
 0x173   : > { %v630_v53 = vadd.f32 %v629_v50, %v604_v47 }
 0x174   : > { %777 = vst [vmem:[#allocation2] sm:$0xff] %v773_v49 }
 0x175   : > { %v650_v54 = vadd.f32 %v649_v51, %v630_v53  ;;  %v749_v55 = vpop.f32.mrf.mxu0  ;;  %v769_v58 = vpop.f32.mrf.mxu1 }
 0x176   : > { %v750_v56 = vadd.f32 %v749_v55, %v607_v52 }
 0x177   : > { %v772_v57 = vmax.f32 %v650_v54, 0.0 }
 0x178   : > { %v770_v60 = vadd.f32 %v769_v58, %v750_v56 }
 0x179   : > { %776 = vst [vmem:[#allocation2 + $0x10] sm:$0xff] %v772_v57 }
 0x17a   : > { %v775_v61 = vmax.f32 %v770_v60, 0.0  ;;  %v709_v62 = vpop.f32.mrf.mxu2  ;;  %v729_v0 = vpop.f32.mrf.mxu3 }
 0x17b   : > { %v710_v63 = vadd.f32 %v709_v62, %v606_v59 }
 0x17c   : > { %779 = vst [vmem:[#allocation2 + $0x8] sm:$0xff] %v775_v61 }
 0x17d   : > { %v730_v1 = vadd.f32 %v729_v0, %v710_v63 }
 0x17f   : > { %v774_v2 = vmax.f32 %v730_v1, 0.0 }
 0x181   : > { %778 = vst [vmem:[#allocation2 + $0x18] sm:$0xff] %v774_v2 }
 0x182 PF: > { %v831_v3 = vld [vmem:[%s1659_s23 + $0x178] sm:$0xff]  ;;  %v830_v5 = vld [vmem:[%s1659_s23 + $0x170] sm:$0xff]  ;;  %v829_v9 = vld [vmem:[%s1659_s23 + $0x168] sm:$0xff]  ;;  %s1099_s21 = sshll.u32 %s1540_s28, 3  ;;  %s947_s1 = sshll.u32 %s1674_s15, 4  ;;  %s948_s1 = int_to_ptr.vmem [resolvable:$true] %s947_s1 }
 0x183   : > { %v799_v4 = vld [vmem:[%s1659_s23 + $0x78] sm:$0xff]  ;;  %892 = vmatpush.msra.mxu2 %v831_v3  ;;  %v798_v7 = vld [vmem:[%s1659_s23 + $0x70] sm:$0xff]  ;;  %v797_v11 = vld [vmem:[%s1659_s23 + $0x68] sm:$0xff]  ;;  %s945_s9 = scalar_lea.hbm %s1788_s7, %s1099_s21  ;;  %s1408_s17 = scalar_lea.hbm %s1788_s7, 32 }
 0x184   : > { %852 = vmatpush.msra.mxu0 %v799_v4  ;;  %v847_v6 = vld [vmem:[%s1659_s23 + $0x1f8] sm:$0xff]  ;;  %v846_v10 = vld [vmem:[%s1659_s23 + $0x1f0] sm:$0xff]  ;;  %v845_v13 = vld [vmem:[%s1659_s23 + $0x1e8] sm:$0xff]  ;;  %s949_s12 = sshll.u32 %s945_s9, 4  ;;  %s950_s12 = int_to_ptr.hbm [resolvable:$true] %s949_s12 }
 0x185   : > { %v815_v8 = vld [vmem:[%s1659_s23 + $0xf8] sm:$0xff]  ;;  %912 = vmatpush.msra.mxu3 %v847_v6  ;;  %893 = vmatpush.msra.mxu2 %v830_v5  ;;  %v814_v12 = vld [vmem:[%s1659_s23 + $0xf0] sm:$0xff]  ;;  %v828_v14 = vld [vmem:[%s1659_s23 + $0x160] sm:$0xff]  ;;  %s1402_s29 = sshra.s32 %s950_s12, 4  ;;  %s1403_s29 = int_to_ptr.hbm [resolvable:$true] %s1402_s29 }
 0x186   : > { %872 = vmatpush.msra.mxu1 %v815_v8  ;;  %853 = vmatpush.msra.mxu0 %v798_v7  ;;  %v796_v15 = vld [vmem:[%s1659_s23 + $0x60] sm:$0xff]  ;;  %v813_v16 = vld [vmem:[%s1659_s23 + $0xe8] sm:$0xff]  ;;  %v827_v19 = vld [vmem:[%s1659_s23 + $0x158] sm:$0xff]  ;;  %s1404_s10 = scalar_lea.hbm %s1403_s29, 8  ;;  %p1409_p2 = scmp.lt.s32.totalorder %s1403_s29, %s1788_s7 }
 0x187   : > { %913 = vmatpush.msra.mxu3 %v846_v10  ;;  %894 = vmatpush.msra.mxu2 %v829_v9  ;;  %v844_v17 = vld [vmem:[%s1659_s23 + $0x1e0] sm:$0xff]  ;;  %v795_v20 = vld [vmem:[%s1659_s23 + $0x58] sm:$0xff]  ;;  %v826_v23 = vld [vmem:[%s1659_s23 + $0x150] sm:$0xff]  ;;  %p1405_p4 = scmp.ne.s32.totalorder %s1403_s29, %s1404_s10  ;;  %p1410_p11 = scmp.lt.s32.totalorder %s1408_s17, %s1404_s10 }
 0x188   : > { %873 = vmatpush.msra.mxu1 %v814_v12  ;;  %854 = vmatpush.msra.mxu0 %v797_v11  ;;  %v812_v18 = vld [vmem:[%s1659_s23 + $0xe0] sm:$0xff]  ;;  %v843_v21 = vld [vmem:[%s1659_s23 + $0x1d8] sm:$0xff]  ;;  %v794_v24 = vld [vmem:[%s1659_s23 + $0x50] sm:$0xff] }
 0x189   : > { %914 = vmatpush.msra.mxu3 %v845_v13  ;;  %895 = vmatpush.msra.mxu2 %v828_v14  ;;  %v811_v22 = vld [vmem:[%s1659_s23 + $0xd8] sm:$0xff]  ;;  %v842_v25 = vld [vmem:[%s1659_s23 + $0x1d0] sm:$0xff]  ;;  %v825_v27 = vld [vmem:[%s1659_s23 + $0x148] sm:$0xff]  ;;  %p1406_p9 = pnand %p1405_p4, %p1614_p7  ;;  %p1411_p12 = por %p1410_p11, %p1409_p2 }
 0x18a   : > { %874 = vmatpush.msra.mxu1 %v813_v16  ;;  %855 = vmatpush.msra.mxu0 %v796_v15  ;;  %v810_v26 = vld [vmem:[%s1659_s23 + $0xd0] sm:$0xff]  ;;  %v793_v28 = vld [vmem:[%s1659_s23 + $0x48] sm:$0xff]  ;;  %v824_v31 = vld [vmem:[%s1659_s23 + $0x140] sm:$0xff] }
 0x18b   : > { %915 = vmatpush.msra.mxu3 %v844_v17  ;;  %896 = vmatpush.msra.mxu2 %v827_v19  ;;  %v841_v29 = vld [vmem:[%s1659_s23 + $0x1c8] sm:$0xff]  ;;  %v792_v32 = vld [vmem:[%s1659_s23 + $0x40] sm:$0xff]  ;;  %v823_v35 = vld [vmem:[%s1659_s23 + $0x138] sm:$0xff]  ;;  %p1407_p10 = pneg %p1406_p9 }
 0x18c   : > { %875 = vmatpush.msra.mxu1 %v812_v18  ;;  %856 = vmatpush.msra.mxu0 %v795_v20  ;;  %v809_v30 = vld [vmem:[%s1659_s23 + $0xc8] sm:$0xff]  ;;  %v840_v33 = vld [vmem:[%s1659_s23 + $0x1c0] sm:$0xff]  ;;  %v791_v36 = vld [vmem:[%s1659_s23 + $0x38] sm:$0xff] }
 0x18d   : > { %916 = vmatpush.msra.mxu3 %v843_v21  ;;  %897 = vmatpush.msra.mxu2 %v826_v23  ;;  %v808_v34 = vld [vmem:[%s1659_s23 + $0xc0] sm:$0xff]  ;;  %v839_v37 = vld [vmem:[%s1659_s23 + $0x1b8] sm:$0xff]  ;;  %v822_v39 = vld [vmem:[%s1659_s23 + $0x130] sm:$0xff]  ;;  %p1412_p13 = pnand %p1411_p12, %p1407_p10 }
 0x18e   : > { %876 = vmatpush.msra.mxu1 %v811_v22  ;;  %857 = vmatpush.msra.mxu0 %v794_v24  ;;  %v807_v38 = vld [vmem:[%s1659_s23 + $0xb8] sm:$0xff]  ;;  %v790_v40 = vld [vmem:[%s1659_s23 + $0x30] sm:$0xff]  ;;  %v821_v43 = vld [vmem:[%s1659_s23 + $0x128] sm:$0xff] }
 0x18f   : > { %917 = vmatpush.msra.mxu3 %v842_v25  ;;  %898 = vmatpush.msra.mxu2 %v825_v27  ;;  %v838_v41 = vld [vmem:[%s1659_s23 + $0x1b0] sm:$0xff]  ;;  %v789_v44 = vld [vmem:[%s1659_s23 + $0x28] sm:$0xff]  ;;  %v820_v47 = vld [vmem:[%s1659_s23 + $0x120] sm:$0xff] }
 0x190   : > { %877 = vmatpush.msra.mxu1 %v810_v26  ;;  %858 = vmatpush.msra.mxu0 %v793_v28  ;;  %v806_v42 = vld [vmem:[%s1659_s23 + $0xb0] sm:$0xff]  ;;  %v837_v45 = vld [vmem:[%s1659_s23 + $0x1a8] sm:$0xff]  ;;  %v788_v48 = vld [vmem:[%s1659_s23 + $0x20] sm:$0xff] }
 0x191   : > { %918 = vmatpush.msra.mxu3 %v841_v29  ;;  %899 = vmatpush.msra.mxu2 %v824_v31  ;;  %v805_v46 = vld [vmem:[%s1659_s23 + $0xa8] sm:$0xff]  ;;  %v836_v49 = vld [vmem:[%s1659_s23 + $0x1a0] sm:$0xff]  ;;  %v819_v51 = vld [vmem:[%s1659_s23 + $0x118] sm:$0xff] }
 0x192   : > { %878 = vmatpush.msra.mxu1 %v809_v30  ;;  %859 = vmatpush.msra.mxu0 %v792_v32  ;;  %v804_v50 = vld [vmem:[%s1659_s23 + $0xa0] sm:$0xff]  ;;  %v787_v52 = vld [vmem:[%s1659_s23 + $0x18] sm:$0xff]  ;;  %v818_v55 = vld [vmem:[%s1659_s23 + $0x110] sm:$0xff] }
 0x193   : > { %919 = vmatpush.msra.mxu3 %v840_v33  ;;  %900 = vmatpush.msra.mxu2 %v823_v35  ;;  %v835_v53 = vld [vmem:[%s1659_s23 + $0x198] sm:$0xff]  ;;  %v786_v56 = vld [vmem:[%s1659_s23 + $0x10] sm:$0xff]  ;;  %v817_v59 = vld [vmem:[%s1659_s23 + $0x108] sm:$0xff] }
 0x194   : > { %879 = vmatpush.msra.mxu1 %v808_v34  ;;  %860 = vmatpush.msra.mxu0 %v791_v36  ;;  %v803_v54 = vld [vmem:[%s1659_s23 + $0x98] sm:$0xff]  ;;  %v834_v57 = vld [vmem:[%s1659_s23 + $0x190] sm:$0xff]  ;;  %v785_v60 = vld [vmem:[%s1659_s23 + $0x8] sm:$0xff] }
 0x195   : > { %920 = vmatpush.msra.mxu3 %v839_v37  ;;  %901 = vmatpush.msra.mxu2 %v822_v39  ;;  %v802_v58 = vld [vmem:[%s1659_s23 + $0x90] sm:$0xff]  ;;  %v833_v61 = vld [vmem:[%s1659_s23 + $0x188] sm:$0xff]  ;;  %v816_v63 = vld [vmem:[%s1659_s23 + $0x100] sm:$0xff] }
 0x196   : > { %880 = vmatpush.msra.mxu1 %v807_v38  ;;  %861 = vmatpush.msra.mxu0 %v790_v40  ;;  %v801_v62 = vld [vmem:[%s1659_s23 + $0x88] sm:$0xff]  ;;  %v784_v0 = vld [vmem:[%s1659_s23] sm:$0xff]  ;;  %v781_v6 = vld [vmem:[#allocation2] sm:$0xff] }
 0x197   : > { %921 = vmatpush.msra.mxu3 %v838_v41  ;;  %902 = vmatpush.msra.mxu2 %v821_v43  ;;  %v782_v1 = vld [vmem:[#allocation2 + $0x18] sm:$0xff]  ;;  %v832_v2 = vld [vmem:[%s1659_s23 + $0x180] sm:$0xff]  ;;  %v1205_v7 = vld [vmem:[%s388_s18] ss:$0 sm:$0xff] }
 0x198   : > { %881 = vmatpush.msra.mxu1 %v806_v42  ;;  %862 = vmatpush.msra.mxu0 %v789_v44  ;;  %v780_v3 = vld [vmem:[#allocation2 + $0x10] sm:$0xff]  ;;  %v783_v4 = vld [vmem:[#allocation2 + $0x8] sm:$0xff] }
 0x199   : > { %922 = vmatpush.msra.mxu3 %v837_v45  ;;  %903 = vmatpush.msra.mxu2 %v820_v47  ;;  %v800_v5 = vld [vmem:[%s1659_s23 + $0x80] sm:$0xff]  ;;  %s935_s23 = scalar_lea.sflag [#allocation5], %s1655_s0 }
 0x19a   : > { %882 = vmatpush.msra.mxu1 %v805_v46  ;;  %863 = vmatpush.msra.mxu0 %v788_v48 }
 0x19b   : > { %923 = vmatpush.msra.mxu3 %v836_v49  ;;  %904 = vmatpush.msra.mxu2 %v819_v51 }
 0x19c   : > { %883 = vmatpush.msra.mxu1 %v804_v50  ;;  %864 = vmatpush.msra.mxu0 %v787_v52 }
 0x19d   : > { %924 = vmatpush.msra.mxu3 %v835_v53  ;;  %905 = vmatpush.msra.mxu2 %v818_v55 }
 0x19e   : > { %884 = vmatpush.msra.mxu1 %v803_v54  ;;  %865 = vmatpush.msra.mxu0 %v786_v56 }
 0x19f   : > { %925 = vmatpush.msra.mxu3 %v834_v57  ;;  %906 = vmatpush.msra.mxu2 %v817_v59 }
 0x1a0   : > { %885 = vmatpush.msra.mxu1 %v802_v58  ;;  %866 = vmatpush.msra.mxu0 %v785_v60 }
 0x1a1   : > { %926 = vmatpush.msra.mxu3 %v833_v61  ;;  %907 = vmatpush.msra.mxu2 %v816_v63 }
 0x1a2   : > { %886 = vmatpush.msra.mxu1 %v801_v62  ;;  %867 = vmatpush.msra.mxu0 %v784_v0 }
 0x1a3   : > { %908 = vmatmul.f32.vlgmr.msra.gmra.mxu2 %v782_v1  ;;  %927 = vmatpush.msra.mxu3 %v832_v2 }
 0x1a4   : > { %868 = vmatmul.f32.vlgmr.msra.gmra.mxu0 %v780_v3  ;;  %928 = vmatmul.f32.vlgmr.msra.gmra.mxu3 %v783_v4 }
 0x1a5   : > { %887 = vmatpush.msra.mxu1 %v800_v5 }
 0x1a6   : > { %888 = vmatmul.f32.vlgmr.msra.gmra.mxu1 %v781_v6 }
 0x221   : > { %v869_v8 = vpop.f32.mrf.mxu0 }
 0x222   : > { %v870_v9 = vadd.f32 %v1205_v7, %v869_v8 }
 0x223   : > { %v889_v10 = vpop.f32.mrf.mxu1 }
 0x224   : > { %v890_v11 = vadd.f32 %v889_v10, %v870_v9 }
 0x226   : > { %v909_v12 = vpop.f32.mrf.mxu2 }
 0x227   : > { %v910_v13 = vadd.f32 %v909_v12, %v890_v11  ;;  %v929_v14 = vpop.f32.mrf.mxu3 }
 0x229   : > { %v930_v15 = vadd.f32 %v929_v14, %v910_v13 }
 0x22b   : > { %1206 = vtanh.f32 %v930_v15 }
 0x231   : > { %v1207_v16 = vpop.eup %1206 }
 0x232   : > { %933 = vst [vmem:[%s1674_s15] sm:$0xff] %v1207_v16 }
 0x233   : > { %1415 = shalt.err (!%p1412_p13)
}
 0x234   : > { %1124 = dma.vmem_to_hbm [thread:$0]  (%p1614_p7), %s948_s1, 128, %s950_s12, %s935_s23  }
 0x235 PF: > { %p1161_p0 = scmp.ge.s32.totalorder %s1466_s27, 2  ;;  %s961_s0 = sand.u32 1, %s1454_s24  }
 0x236   : > { %s962_s15 = scalar_lea.sflag [#allocation5], %s961_s0 }
 0x237   : > { %p1147_p3 = pnand %p1161_p0, %p1554_p6 }
 0x239   : > { %p1148_p5 = pneg %p1147_p3 }
 0x23b   : > { %1449 = dma.done.wait (%p1148_p5), %s962_s15, 128  }
 0x23c   : > { %1451 = vsyncadd (%p1148_p5), %s962_s15, 4294967168  ;;  %p23_p1 = scmp.ge.s32.totalorder %s1598_s13, 6   ;;  %s1802_s24 = smov %s1458_s25 }
 0x23d   : > { %s1803_s25 = smov %s1462_s26  ;;  %s1804_s26 = smov %s1610_s11 }
 0x23e   : > { %s1805_s27 = smov %s1598_s13  ;;  %25 = sbr.rel (!%p23_p1) target bundleno = 11 (0xb), region = 121 }
 0x243   :  { %968 = vsyncpa [#allocation4], 1 }
 0x244   :  { %970 = vsyncpa [#allocation4 + $0x1], 1 }
 0x245   :  { %971 = vsyncpa [#allocation7], 1 }
 0x246   :  { %972 = vsyncpa [#allocation10], 1 }
 0x247   :  { %973 = vsyncpa [#allocation13], 1 }
 0x248   :  { %975 = vsyncpa [#allocation13 + $0x1], 1 }
 0x249   :  { %976 = vsyncpa [#allocation5], 1 }
 0x24a   :  { %978 = vsyncpa [#allocation5 + $0x1], 1 }

</bundles_post_ra>
